<compile_context>
chip_gen: v6e
topology: v6e:2x2x1
jax: 0.10.0
libtpu: 0.0.40
codegen_flags: <defaults>
</compile_context>

<pallas_src>
import jax
import jax.numpy as jnp
from jax import lax
from jax.experimental import pallas as pl
from jax.experimental.pallas import tpu as pltpu

B = 2          # batch
L = 140        # sequence length (fixed by Linear(8960, 420): 8960 = 64 * 140)
C1 = 32        # conv1 out channels
C2 = 64        # conv2 out channels
FLAT = C2 * L  # 8960
OUT = 420      # dense out features
TK = 4480      # dense K-tile (8960 = 2 * 4480, multiple of 128)


# ---------------------------------------------------------------------------
# Kernel 1: conv1 + sigmoid + conv2 + sigmoid, channel-major (C, L) tiles,
#           one batch element per grid step (grid axis "parallel").
# ---------------------------------------------------------------------------
def feature_kernel(x_ref, w1_ref, b1_ref, w2_ref, b2_ref, h2_ref):
    x = x_ref[...]        # (1, L)      single input channel, L in lanes
    w1 = w1_ref[...]      # (C1, 3)     conv1 weight, taps in lanes

    # Shift matrices built in-kernel (no HBM constant streams):
    #   (v @ s_up)[:, l] = v[:, l-1]  (0 at l=0)
    #   (v @ s_dn)[:, l] = v[:, l+1]  (0 at l=L-1)
    rows = lax.broadcasted_iota(jnp.int32, (L, L), 0)
    cols = lax.broadcasted_iota(jnp.int32, (L, L), 1)
    s_up = (rows + 1 == cols).astype(jnp.float32)
    s_dn = (rows == cols + 1).astype(jnp.float32)

    # conv1 (in=1, out=32, k=3, same padding), channel-major.
    # tap k=0 multiplies x[l-1], k=1 x[l], k=2 x[l+1].
    t0 = w1[:, 0:1] * x                                   # (C1, L)
    t1 = w1[:, 1:2] * x
    t2 = w1[:, 2:3] * x
    pre1 = (jnp.dot(t0, s_up, preferred_element_type=jnp.float32)
            + t1
            + jnp.dot(t2, s_dn, preferred_element_type=jnp.float32)
            + b1_ref[...])                                # (C1, L)
    h1 = pl.reciprocal(1.0 + jnp.exp(-pre1), approx=True)  # sigmoid

    # conv2 (in=32, out=64, k=3, same padding) as ONE (64,96)@(96,140) matmul.
    h1_m1 = jnp.dot(h1, s_up, preferred_element_type=jnp.float32)   # h1[:, l-1]
    h1_p1 = jnp.dot(h1, s_dn, preferred_element_type=jnp.float32)   # h1[:, l+1]
    h1cat = jnp.concatenate([h1_m1, h1, h1_p1], axis=0)             # (3*C1, L)
    pre2 = (jnp.dot(w2_ref[...], h1cat, preferred_element_type=jnp.float32)
            + b2_ref[...])                                          # (C2, L)
    h2_ref[...] = pl.reciprocal(1.0 + jnp.exp(-pre2), approx=True)  # sigmoid


def run_features(x_ncl, w1p, b1p, w2p, b2p):
    nb = x_ncl.shape[0]
    feat_cost = pl.CostEstimate(
        flops=nb * (4 * 2 * C1 * L * L + 2 * C2 * (3 * C1) * L),
        transcendentals=nb * (C1 + C2) * L,
        bytes_accessed=nb * (L + C2 * L) * 4 + (C1 * 3 + C1 + C2 * 3 * C1 + C2) * 4,
    )
    return pl.pallas_call(
        feature_kernel,
        out_shape=jax.ShapeDtypeStruct((nb, C2, L), jnp.float32),
        grid_spec=pltpu.PrefetchScalarGridSpec(
            num_scalar_prefetch=0,
            grid=(nb,),
            in_specs=[
                pl.BlockSpec((None, 1, L), lambda b: (b, 0, 0)),   # x (NCL, squeezed batch)
                pl.BlockSpec((C1, 3), lambda b: (0, 0)),           # conv1 weight (taps)
                pl.BlockSpec((C1, 1), lambda b: (0, 0)),           # conv1 bias (column)
                pl.BlockSpec((C2, 3 * C1), lambda b: (0, 0)),      # conv2 weight (taps fused)
                pl.BlockSpec((C2, 1), lambda b: (0, 0)),           # conv2 bias (column)
            ],
            out_specs=pl.BlockSpec((None, C2, L), lambda b: (b, 0, 0)),
        ),
        compiler_params=pltpu.CompilerParams(
            dimension_semantics=("parallel",)),
        cost_estimate=feat_cost,
    )(x_ncl, w1p, b1p, w2p, b2p)


# ---------------------------------------------------------------------------
# Kernel 2: dense  y = flat @ wd.T + bd, weight streamed bf16 in native layout,
#           K-tiled with a resident f32 accumulator.
# ---------------------------------------------------------------------------
def dense_kernel(h_ref, w_ref, b_ref, o_ref, acc_ref):
    @pl.when(pl.program_id(0) == 0)
    def _init():
        acc_ref[...] = jnp.zeros_like(acc_ref)

    h_bf = h_ref[...].astype(jnp.bfloat16)        # (B, TK)
    # contract h dim 1 with wd dim 1  (wd stays in its native (OUT, K) layout)
    acc_ref[...] += lax.dot_general(
        h_bf, w_ref[...],
        dimension_numbers=(((1,), (1,)), ((), ())),
        preferred_element_type=jnp.float32)       # (B, OUT)

    @pl.when(pl.program_id(0) == pl.num_programs(0) - 1)
    def _finalize():
        o_ref[...] = (acc_ref[...] + b_ref[...]).astype(o_ref.dtype)


def run_dense(h_flat, wd_bf16, bd_row):
    nb, k = h_flat.shape
    nk = k // TK
    dense_cost = pl.CostEstimate(
        flops=2 * nb * FLAT * OUT,
        transcendentals=0,
        bytes_accessed=OUT * FLAT * 2 + nb * FLAT * 4 + nb * OUT * 4 + OUT * 4,
    )
    return pl.pallas_call(
        dense_kernel,
        out_shape=jax.ShapeDtypeStruct((nb, OUT), jnp.float32),
        grid_spec=pltpu.PrefetchScalarGridSpec(
            num_scalar_prefetch=0,
            grid=(nk,),
            in_specs=[
                pl.BlockSpec((nb, TK), lambda kk: (0, kk)),        # activations
                pl.BlockSpec((OUT, TK), lambda kk: (0, kk)),       # weight, native layout, bf16
                pl.BlockSpec((1, OUT), lambda kk: (0, 0)),         # bias
            ],
            out_specs=pl.BlockSpec((nb, OUT), lambda kk: (0, 0)),
            scratch_shapes=[pltpu.VMEM((nb, OUT), jnp.float32)],
        ),
        compiler_params=pltpu.CompilerParams(
            dimension_semantics=("arbitrary",)),
        cost_estimate=dense_cost,
    )(h_flat, wd_bf16, bd_row)


# ---------------------------------------------------------------------------
# Parameter prep (one-time, outside the per-call forward path)
# ---------------------------------------------------------------------------
def prepare_params(params):
    w1, b1, w2, b2, wd, bd = params
    w1p = w1[:, 0, :]                                        # (32, 3)   taps in lanes
    b1p = b1.reshape(C1, 1)
    w2p = jnp.transpose(w2, (0, 2, 1)).reshape(C2, 3 * C1)   # (64, 96)  column = k*32 + c
    b2p = b2.reshape(C2, 1)
    wdp = wd.astype(jnp.bfloat16)                            # (420, 8960) native layout, bf16 stream
    bdp = bd.reshape(1, OUT)
    return (w1p, b1p, w2p, b2p, wdp, bdp)


# ---------------------------------------------------------------------------
# Forward pass (wrapper: only free reshapes, no transposes, no weight copies)
# ---------------------------------------------------------------------------
def vmdnet_forward(x_ncl, prep):
    """x_ncl: (B, 1, 140) float32, PyTorch NCL layout."""
    w1p, b1p, w2p, b2p, wdp, bdp = prep
    nb = x_ncl.shape[0]

    h2 = run_features(x_ncl.astype(jnp.float32), w1p, b1p, w2p, b2p)  # (B, 64, 140)
    flat = h2.reshape(nb, FLAT)          # channel-major flatten == torch Flatten (free reshape)
    y = run_dense(flat, wdp, bdp)        # (B, 420)
    return y.reshape(-1, 3, L)           # (B, 3, 140)


# ---------------------------------------------------------------------------
# Pure-JAX reference replicating PyTorch semantics exactly
# ---------------------------------------------------------------------------
def reference_forward(x_ncl, params):
    w1, b1, w2, b2, wd, bd = params

    def conv1d_same(h, w, bias):
        # h: (B, Cin, L), w: (Cout, Cin, 3)
        hp = jnp.pad(h, ((0, 0), (0, 0), (1, 1)))
        out = sum(
            jnp.einsum('oc,bcl->bol', w[:, :, k], hp[:, :, k:k + L],
                       precision=lax.Precision.HIGHEST)
            for k in range(3))
        return out + bias[None, :, None]

    h1 = jax.nn.sigmoid(conv1d_same(x_ncl, w1, b1))
    h2 = jax.nn.sigmoid(conv1d_same(h1, w2, b2))
    flat = h2.reshape(x_ncl.shape[0], -1)                    # channel-major
    y = jnp.dot(flat, wd.T, precision=lax.Precision.HIGHEST) + bd
    return y.reshape(-1, 3, L)


if __name__ == "__main__":
    key = jax.random.PRNGKey(0)
    k1, k2, k3, k4, k5, k6, kx = jax.random.split(key, 7)

    # Deterministic synthetic parameters (PyTorch-shaped)
    w1 = jax.random.normal(k1, (C1, 1, 3), jnp.float32) / jnp.sqrt(3.0)
    b1 = jax.random.normal(k2, (C1,), jnp.float32) * 0.1
    w2 = jax.random.normal(k3, (C2, C1, 3), jnp.float32) / jnp.sqrt(3.0 * C1)
    b2 = jax.random.normal(k4, (C2,), jnp.float32) * 0.1
    wd = jax.random.normal(k5, (OUT, FLAT), jnp.float32) / jnp.sqrt(float(FLAT))
    bd = jax.random.normal(k6, (OUT,), jnp.float32) * 0.1
    params = (w1, b1, w2, b2, wd, bd)
    prep = jax.block_until_ready(prepare_params(params))     # one-time weight prep (bf16 cast etc.)

    x = jax.random.normal(kx, (B, 1, L), jnp.float32)         # (2, 1, 140)

    out = jax.block_until_ready(vmdnet_forward(x, prep))
    ref = jax.block_until_ready(reference_forward(x, params))

    assert out.shape == (B, 3, L), out.shape
    max_err = float(jnp.max(jnp.abs(out - ref)))
    if max_err > 2e-2:
        raise AssertionError(f"Pallas output mismatch vs reference: {max_err}")

    print("KERNEL_OK")
</pallas_src>

<mosaic_0001>
module attributes {stable_mosaic.version = 11 : i64} {
  func.func @feature_kernel(%arg0: i32, %arg1: memref<1x1x140xf32, #tpu.memory_space<vmem>>, %arg2: memref<32x3xf32, #tpu.memory_space<vmem>>, %arg3: memref<32x1xf32, #tpu.memory_space<vmem>>, %arg4: memref<64x96xf32, #tpu.memory_space<vmem>>, %arg5: memref<64x1xf32, #tpu.memory_space<vmem>>, %arg6: memref<1x64x140xf32, #tpu.memory_space<vmem>>) attributes {dimension_semantics = [#tpu.dimension_semantics<parallel>], iteration_bounds = array<i64: 2>, scalar_prefetch = 0 : i64, scratch_operands = 0 : i64, tpu.core_type = #tpu.core_type<tc>, window_params = [{transform_indices = @transform_0, window_bounds = array<i64: 1, 1, 140>}, {pipeline_mode = #tpu.pipeline_mode<synchronous>, transform_indices = @transform_1, window_bounds = array<i64: 32, 3>}, {pipeline_mode = #tpu.pipeline_mode<synchronous>, transform_indices = @transform_2, window_bounds = array<i64: 32, 1>}, {pipeline_mode = #tpu.pipeline_mode<synchronous>, transform_indices = @transform_3, window_bounds = array<i64: 64, 96>}, {pipeline_mode = #tpu.pipeline_mode<synchronous>, transform_indices = @transform_4, window_bounds = array<i64: 64, 1>}, {transform_indices = @transform_5, window_bounds = array<i64: 1, 64, 140>}]} {
    %c0 = arith.constant 0 : index
    %c0_0 = arith.constant 0 : index
    %c0_1 = arith.constant 0 : index
    %0 = vector.load %arg1[%c0, %c0_0, %c0_1] : memref<1x1x140xf32, #tpu.memory_space<vmem>>, vector<1x1x140xf32>
    %1 = vector.shape_cast %0 : vector<1x1x140xf32> to vector<1x140xf32>
    %c0_2 = arith.constant 0 : index
    %c0_3 = arith.constant 0 : index
    %2 = vector.load %arg2[%c0_2, %c0_3] : memref<32x3xf32, #tpu.memory_space<vmem>>, vector<32x3xf32>
    %3 = tpu.iota {dimensions = array<i32: 0>} : vector<140x140xi32>
    %4 = tpu.iota {dimensions = array<i32: 1>} : vector<140x140xi32>
    %c1_i32 = arith.constant 1 : i32
    %5 = vector.broadcast %c1_i32 : i32 to vector<140x140xi32>
    %6 = arith.addi %3, %5 : vector<140x140xi32>
    %7 = arith.cmpi eq, %6, %4 : vector<140x140xi32>
    %8 = arith.extui %7 : vector<140x140xi1> to vector<140x140xi32>
    %9 = arith.sitofp %8 : vector<140x140xi32> to vector<140x140xf32>
    %c1_i32_4 = arith.constant 1 : i32
    %10 = vector.broadcast %c1_i32_4 : i32 to vector<140x140xi32>
    %11 = arith.addi %4, %10 : vector<140x140xi32>
    %12 = arith.cmpi eq, %3, %11 : vector<140x140xi32>
    %13 = arith.extui %12 : vector<140x140xi1> to vector<140x140xi32>
    %14 = arith.sitofp %13 : vector<140x140xi32> to vector<140x140xf32>
    %15 = vector.extract_strided_slice %2 {offsets = [0, 0], sizes = [32, 1], strides = [1, 1]} : vector<32x3xf32> to vector<32x1xf32>
    %16 = vector.broadcast %15 : vector<32x1xf32> to vector<32x140xf32>
    %17 = vector.broadcast %1 : vector<1x140xf32> to vector<32x140xf32>
    %18 = arith.mulf %16, %17 : vector<32x140xf32>
    %19 = vector.extract_strided_slice %2 {offsets = [0, 1], sizes = [32, 1], strides = [1, 1]} : vector<32x3xf32> to vector<32x1xf32>
    %20 = vector.broadcast %19 : vector<32x1xf32> to vector<32x140xf32>
    %21 = vector.broadcast %1 : vector<1x140xf32> to vector<32x140xf32>
    %22 = arith.mulf %20, %21 : vector<32x140xf32>
    %23 = vector.extract_strided_slice %2 {offsets = [0, 2], sizes = [32, 1], strides = [1, 1]} : vector<32x3xf32> to vector<32x1xf32>
    %24 = vector.broadcast %23 : vector<32x1xf32> to vector<32x140xf32>
    %25 = vector.broadcast %1 : vector<1x140xf32> to vector<32x140xf32>
    %26 = arith.mulf %24, %25 : vector<32x140xf32>
    %cst = arith.constant dense<0.000000e+00> : vector<32x140xf32>
    %27 = tpu.matmul %18, %9, %cst {dimension_numbers = #tpu.dot_dimension_numbers<[1], [0], [0], [1], [0, 0, 1, 1], [], []>} : vector<32x140xf32>, vector<140x140xf32>, vector<32x140xf32> -> vector<32x140xf32>
    %28 = arith.addf %27, %22 : vector<32x140xf32>
    %cst_5 = arith.constant dense<0.000000e+00> : vector<32x140xf32>
    %29 = tpu.matmul %26, %14, %cst_5 {dimension_numbers = #tpu.dot_dimension_numbers<[1], [0], [0], [1], [0, 0, 1, 1], [], []>} : vector<32x140xf32>, vector<140x140xf32>, vector<32x140xf32> -> vector<32x140xf32>
    %30 = arith.addf %28, %29 : vector<32x140xf32>
    %c0_6 = arith.constant 0 : index
    %c0_7 = arith.constant 0 : index
    %31 = vector.load %arg3[%c0_6, %c0_7] : memref<32x1xf32, #tpu.memory_space<vmem>>, vector<32x1xf32>
    %32 = vector.broadcast %31 : vector<32x1xf32> to vector<32x140xf32>
    %33 = arith.addf %30, %32 : vector<32x140xf32>
    %cst_8 = arith.constant 0.000000e+00 : f32
    %34 = vector.broadcast %cst_8 : f32 to vector<32x140xf32>
    %35 = arith.subf %34, %33 : vector<32x140xf32>
    %36 = math.exp %35 : vector<32x140xf32>
    %cst_9 = arith.constant 1.000000e+00 : f32
    %37 = vector.broadcast %cst_9 : f32 to vector<32x140xf32>
    %38 = arith.addf %37, %36 : vector<32x140xf32>
    %39 = tpu.reciprocal %38 {approx = true} : vector<32x140xf32> -> vector<32x140xf32>
    %cst_10 = arith.constant dense<0.000000e+00> : vector<32x140xf32>
    %40 = tpu.matmul %39, %9, %cst_10 {dimension_numbers = #tpu.dot_dimension_numbers<[1], [0], [0], [1], [0, 0, 1, 1], [], []>} : vector<32x140xf32>, vector<140x140xf32>, vector<32x140xf32> -> vector<32x140xf32>
    %cst_11 = arith.constant dense<0.000000e+00> : vector<32x140xf32>
    %41 = tpu.matmul %39, %14, %cst_11 {dimension_numbers = #tpu.dot_dimension_numbers<[1], [0], [0], [1], [0, 0, 1, 1], [], []>} : vector<32x140xf32>, vector<140x140xf32>, vector<32x140xf32> -> vector<32x140xf32>
    %42 = tpu.concatenate %40, %39, %41 in 0 : vector<32x140xf32>, vector<32x140xf32>, vector<32x140xf32> -> vector<96x140xf32>
    %c0_12 = arith.constant 0 : index
    %c0_13 = arith.constant 0 : index
    %43 = vector.load %arg4[%c0_12, %c0_13] : memref<64x96xf32, #tpu.memory_space<vmem>>, vector<64x96xf32>
    %cst_14 = arith.constant dense<0.000000e+00> : vector<64x140xf32>
    %44 = tpu.matmul %43, %42, %cst_14 {dimension_numbers = #tpu.dot_dimension_numbers<[1], [0], [0], [1], [0, 0, 1, 1], [], []>} : vector<64x96xf32>, vector<96x140xf32>, vector<64x140xf32> -> vector<64x140xf32>
    %c0_15 = arith.constant 0 : index
    %c0_16 = arith.constant 0 : index
    %45 = vector.load %arg5[%c0_15, %c0_16] : memref<64x1xf32, #tpu.memory_space<vmem>>, vector<64x1xf32>
    %46 = vector.broadcast %45 : vector<64x1xf32> to vector<64x140xf32>
    %47 = arith.addf %44, %46 : vector<64x140xf32>
    %cst_17 = arith.constant 0.000000e+00 : f32
    %48 = vector.broadcast %cst_17 : f32 to vector<64x140xf32>
    %49 = arith.subf %48, %47 : vector<64x140xf32>
    %50 = math.exp %49 : vector<64x140xf32>
    %cst_18 = arith.constant 1.000000e+00 : f32
    %51 = vector.broadcast %cst_18 : f32 to vector<64x140xf32>
    %52 = arith.addf %51, %50 : vector<64x140xf32>
    %53 = tpu.reciprocal %52 {approx = true} : vector<64x140xf32> -> vector<64x140xf32>
    %c0_19 = arith.constant 0 : index
    %c0_20 = arith.constant 0 : index
    %c0_21 = arith.constant 0 : index
    %54 = vector.load %arg6[%c0_19, %c0_20, %c0_21] : memref<1x64x140xf32, #tpu.memory_space<vmem>>, vector<1x64x140xf32>
    %55 = vector.shape_cast %54 : vector<1x64x140xf32> to vector<64x140xf32>
    %56 = vector.shape_cast %53 : vector<64x140xf32> to vector<1x64x140xf32>
    tpu.vector_store %arg6[%c0_19, %c0_20, %c0_21], %56 {strides = array<i32>} : memref<1x64x140xf32, #tpu.memory_space<vmem>>, vector<1x64x140xf32>,
    return
  }
  func.func @transform_0(%arg0: i32) -> (i32, i32, i32) {
    %c0_i32 = arith.constant 0 : i32
    %c0_i32_0 = arith.constant 0 : i32
    %c0_i32_1 = arith.constant 0 : i32
    return %arg0, %c0_i32, %c0_i32_0 : i32, i32, i32
  }
  func.func @transform_1(%arg0: i32) -> (i32, i32) {
    %c0_i32 = arith.constant 0 : i32
    %c0_i32_0 = arith.constant 0 : i32
    %c0_i32_1 = arith.constant 0 : i32
    return %c0_i32, %c0_i32_0 : i32, i32
  }
  func.func @transform_2(%arg0: i32) -> (i32, i32) {
    %c0_i32 = arith.constant 0 : i32
    %c0_i32_0 = arith.constant 0 : i32
    %c0_i32_1 = arith.constant 0 : i32
    return %c0_i32, %c0_i32_0 : i32, i32
  }
  func.func @transform_3(%arg0: i32) -> (i32, i32) {
    %c0_i32 = arith.constant 0 : i32
    %c0_i32_0 = arith.constant 0 : i32
    %c0_i32_1 = arith.constant 0 : i32
    return %c0_i32, %c0_i32_0 : i32, i32
  }
  func.func @transform_4(%arg0: i32) -> (i32, i32) {
    %c0_i32 = arith.constant 0 : i32
    %c0_i32_0 = arith.constant 0 : i32
    %c0_i32_1 = arith.constant 0 : i32
    return %c0_i32, %c0_i32_0 : i32, i32
  }
  func.func @transform_5(%arg0: i32) -> (i32, i32, i32) {
    %c0_i32 = arith.constant 0 : i32
    %c0_i32_0 = arith.constant 0 : i32
    %c0_i32_1 = arith.constant 0 : i32
    return %arg0, %c0_i32, %c0_i32_0 : i32, i32, i32
  }
}

</mosaic_0001>

<bundles_post_ra>
// kernel: tpu_custom_call.1
= control target key start
LH: loop header
LB: loop body
LE: loop exit
PB: predicated region body
PF: predicated region fallthrough
CT: control target
= control target key end

     0   :  { %10 = vsyncpa [#allocation3], 0  ;;  %s2719_s0 = inlined_call_operand.vmem [shape: f32[2,1,140], index: 0, kind: input, shape index: {}]   ;;  %s2720_s1 = inlined_call_operand.vmem [shape: f32[32,3], index: 1, kind: input, shape index: {}]   ;;  %s2721_s2 = inlined_call_operand.vmem [shape: f32[32,1], index: 2, kind: input, shape index: {}]   ;;  %s2722_s3 = inlined_call_operand.vmem [shape: f32[64,96], index: 3, kind: input, shape index: {}]   ;;  %s2723_s4 = inlined_call_operand.vmem [shape: f32[64,1], index: 4, kind: input, shape index: {}]   ;;  %s2724_s5 = inlined_call_operand.hbm [shape: f32[2,64,140], index: 5, kind: output, shape index: {}]  }
   0x1   :  { %12 = vsyncpa [#allocation3 + $0x1], 0  ;;  %s1849_s18 = smov 0   ;;  %s1851_s19 = smov 0  }
   0x2   :  { %s1853_s20 = smov 0   ;;  %s1855_s21 = smov 0  }
   0x3 LB: > { %s1870_s22 = sadd.s32 4294967295, %s1809_s21   ;;  %s1422_s23 = sadd.s32 4294967294, %s1809_s21   ;;  %s1809_s21 = sphi %s1855_s21, %s2772_s21   ;;  %s1805_s20 = sphi %s1853_s20, %s2771_s20   ;;  %s1801_s19 = sphi %s1851_s19, %s2770_s19   ;;  %s1797_s18 = sphi %s1849_s18, %s2769_s18  }
   0x4   : > { %s1874_s24 = sadd.s32 1, %s1809_s21   ;;  %s135_s25 = sadd.s32 1, %s1805_s20 }
   0x5   : > { %s132_s26 = ssub.s32 %s1809_s21, %s1874_s24  ;;  %p145_p0 = scmp.ne.s32.totalorder %s1805_s20, %s1801_s19 }
   0x6   : > { %p133_p1 = scmp.eq.s32.totalorder %s132_s26, 0  ;;  %p146_p2 = scmp.eq.s32.totalorder %s1870_s22, 1 }
   0x7   : > { %p151_p3 = scmp.ne.s32.totalorder %s1801_s19, %s1797_s18  ;;  %p152_p4 = scmp.eq.s32.totalorder %s1422_s23, 1 }
   0x8   : > { %s1885_s27 = scalar_select %p133_p1, %s1805_s20, %s135_s25  }
   0x9   : > { %p1887_p5 = por %p146_p2, %p145_p0  ;;  %p1891_p6 = por %p152_p4, %p151_p3 }
   0xa   : > { %p1425_p7 = scmp.ge.s32.totalorder %s1809_s21, 1  ;;  %p189_p8 = scmp.lt.s32.totalorder %s1809_s21, 3 }
   0xc   : > { %p190_p9 = pnand %p1425_p7, %p189_p8 }
   0xd   : > { %p216_p10 = scmp.lt.s32.totalorder (!%p190_p9), %s1870_s22, 1  ;;  %s213_s10 = sand.u32 (!%p190_p9), 1, %s1801_s19  }
   0xe   : > { %193 = sbr.rel (%p190_p9) target bundleno = 881 (0x371), region = 40  ;;  %s1426_s11 = sshll.u32 (!%p190_p9), %s213_s10, 7 }
   0xf   : > { %s2642_s12 = scalar_lea.vmem (!%p190_p9), [#allocation2], %s1426_s11  ;;  %s1571_s13 = sshll.u32 (!%p190_p9), %s1870_s22, 11 }
  0x10   : > { %s1360_s14 = sshll.u32 (!%p190_p9), %s2642_s12, 4  ;;  %s2671_s17 = scalar_lea.hbm (!%p190_p9), %s2724_s5, %s1571_s13  ;;  %s2673_s14 = int_to_ptr.vmem [resolvable:$true] %s1360_s14 }
  0x11   : > { %s2679_s23 = scalar_lea.sflag (!%p190_p9), [#allocation3], %s213_s10  ;;  %s1816_s25 = smov (!%p190_p9), [#allocation2]  }
  0x12   : > { %s1753_s26 = sshll.u32 (!%p190_p9), %s1816_s25, 4  ;;  %s1754_s26 = int_to_ptr.vmem [resolvable:$false] %s1753_s26 }
  0x13   : > { %v1900_v0 = vld [vmem:[%s2720_s1 + $0x8] sm:$0xff]  ;;  %v1905_v1 = vld [vmem:[%s2720_s1] sm:$0xff]  ;;  %v225_v2 = vlaneseq  ;;  %v1811_v3 = vmov 0   ;;  %v1812_v6 = vmov 0.0   ;;  %v1813_v12 = vmov 2   ;;  %v1949_v16 = vld [vmem:[%s2720_s1 + $0x10] sm:$0xff]  ;;  %p1756_p0 = scmp.lt.s32.totalorder %s2673_s14, %s1754_s26 }
  0x14   : > { %1644 = vset.pattern.permute.xlu1 %v1811_v3  ;;  %1642 = vset.pattern.permute.xlu0 %v1811_v3  ;;  %v1814_v18 = vmov 1.0   ;;  %v1994_v22 = vld [vmem:[%s2720_s1 + $0x18] sm:$0xff]  ;;  %v1815_v51 = vmov 1   ;;  %v794_v52 = vld [vmem:[%s2721_s2] sm:$0xff]  ;;  %v795_v53 = vld [vmem:[%s2721_s2 + $0x8] sm:$0xff]  ;;  %s217_s30 = scalar_select %p216_p10, %s1870_s22, 1 }
  0x15   : > { %490 = vperm.xlu1 %1644, %v1900_v0   ;;  %485 = vperm.xlu0 %1642, %v1905_v1   ;;  %v1911_v4 = vshrl.u32 %v225_v2, 7  ;;  %v1913_v5 = vand.u32 127, %v225_v2  ;;  %v797_v54 = vld [vmem:[%s2721_s2 + $0x18] sm:$0xff]  ;;  %v1065_v55 = vld [vmem:[%s2723_s4 + $0x8] sm:$0xff]  ;;  %v796_v57 = vld [vmem:[%s2721_s2 + $0x10] sm:$0xff]  ;;  %s1749_s22 = scalar_lea.vmem %s2673_s14, 2048 }
  0x16   : > { %697 = vmatprep.subr.mxu1 %v1812_v6  ;;  %v1067_v56 = vld [vmem:[%s2723_s4 + $0x18] sm:$0xff]  ;;  %v1069_v58 = vld [vmem:[%s2723_s4 + $0x28] sm:$0xff]  ;;  %v1064_v59 = vld [vmem:[%s2723_s4] sm:$0xff]  ;;  %s1427_s6 = sshll.u32 %s217_s30, 1  ;;  %p1750_p11 = scmp.ne.s32.totalorder %s2673_s14, %s1749_s22 }
  0x17   : > { %v1917_v7 = vadd.s32 120, %v1911_v4  ;;  %v1920_v8 = vadd.s32 128, %v1913_v5  ;;  %v1923_v9 = vadd.s32 112, %v1911_v4  ;;  %v1926_v10 = vadd.s32 104, %v1911_v4  ;;  %v1071_v60 = vld [vmem:[%s2723_s4 + $0x38] sm:$0xff]  ;;  %v1066_v61 = vld [vmem:[%s2723_s4 + $0x10] sm:$0xff]  ;;  %s219_s9 = scalar_lea.vmem %s2719_s0, %s1427_s6 }
  0x18   : > { %v1929_v11 = vadd.s32 1, %v1913_v5  ;;  %v1938_v15 = vadd.s32 96, %v1911_v4  ;;  %v1963_v19 = vadd.s32 88, %v1911_v4  ;;  %v1984_v21 = vadd.s32 80, %v1911_v4  ;;  %v1068_v62 = vld [vmem:[%s2723_s4 + $0x20] sm:$0xff]  ;;  %v1070_v63 = vld [vmem:[%s2723_s4 + $0x30] sm:$0xff]  ;;  %p1751_p12 = pnand %p1750_p11, %p1887_p5 }
  0x19   : > { %1645 = vset.pattern.permute.xlu1 %v1813_v12  ;;  %1643 = vset.pattern.permute.xlu0 %v1813_v12  ;;  %v1932_v13 = vadd.s32 1, %v1917_v7  ;;  %v1935_v14 = vadd.s32 1, %v1923_v9  ;;  %v1956_v17 = vadd.s32 1, %v1926_v10  ;;  %v2003_v24 = vadd.s32 72, %v1911_v4  ;;  %v220_v2 = vld [vmem:[%s219_s9] sm:$0x3] }
  0x1a   : > { %551 = vperm.xlu1 %1645, %v1900_v0   ;;  %547 = vperm.xlu0 %1643, %v1905_v1   ;;  %vm405_vm0 = vcmp.eq.s32.totalorder %v1917_v7, %v1929_v11  ;;  %vm403_vm1 = vcmp.eq.s32.totalorder %v1923_v9, %v1929_v11  ;;  %v1977_v20 = vadd.s32 1, %v1938_v15  ;;  %vm401_vm5 = vcmp.eq.s32.totalorder %v1926_v10, %v1929_v11  ;;  %p1752_p13 = pneg %p1751_p12  ;;  %s1755_s30 = scalar_lea.vmem %s1754_s26, 4096 }
  0x1b   : > { %vm296_vm2 = vcmp.eq.s32.totalorder %v1932_v13, %v1920_v8  ;;  %vm295_vm3 = vcmp.eq.s32.totalorder %v1932_v13, %v1913_v5  ;;  %1489 = vmatpush1.msk.msra.mxu1 %vm405_vm0, %v1814_v18  ;;  %vm293_vm4 = vcmp.eq.s32.totalorder %v1935_v14, %v1913_v5  ;;  %vm291_vm6 = vcmp.eq.s32.totalorder %v1956_v17, %v1913_v5  ;;  %p1757_p1 = scmp.lt.s32.totalorder %s1755_s30, %s1749_s22 }
  0x1c   : > { %1466 = vmatprep.subr.msk.mxu0 %vm296_vm2, %v1814_v18  ;;  %699 = vmatprep.subr.mxu1 %v1812_v6  ;;  %v2000_v23 = vadd.s32 1, %v1963_v19  ;;  %vm289_vm7 = vcmp.eq.s32.totalorder %v1977_v20, %v1913_v5  ;;  %v2018_v25 = vadd.s32 1, %v1984_v21  ;;  %v2021_v26 = vadd.s32 64, %v1911_v4 }
  0x1d   : > { %1467 = vmatpush1.msk.msra.mxu0 %vm295_vm3, %v1814_v18  ;;  %1490 = vmatpush1.msk.msra.mxu1 %vm403_vm1, %v1814_v18  ;;  %vm2741_vm8 = vcmp.eq.s32.totalorder %v1938_v15, %v1929_v11  ;;  %v2035_v27 = vadd.s32 1, %v2003_v24  ;;  %v2038_v28 = vadd.s32 56, %v1911_v4  ;;  %vm2734_vm10 = vcmp.eq.s32.totalorder %v1963_v19, %v1929_v11  ;;  %p1758_p2 = por %p1757_p1, %p1756_p0 }
  0x1e   : > { %1646 = vset.pattern.permute.xlu1 %v1811_v3  ;;  %555 = vperm.xlu0 %1643, %v1949_v16   ;;  %vm2744_vm9 = vcmp.eq.s32.totalorder %v2000_v23, %v1913_v5  ;;  %vm2725_vm11 = vcmp.eq.s32.totalorder %v2018_v25, %v1913_v5  ;;  %v2055_v29 = vadd.s32 1, %v2021_v26  ;;  %v2058_v30 = vadd.s32 48, %v1911_v4 }
  0x1f   : > { %495 = vperm.xlu1 %1646, %v1949_v16   ;;  %592 = vmatprep.subr.mxu0 %v1812_v6  ;;  %vm2726_vm12 = vcmp.eq.s32.totalorder %v1984_v21, %v1929_v11  ;;  %vm2727_vm13 = vcmp.eq.s32.totalorder %v2035_v27, %v1913_v5  ;;  %v2075_v31 = vadd.s32 1, %v2038_v28  ;;  %v2078_v32 = vadd.s32 40, %v1911_v4  ;;  %p1759_p3 = pnand %p1758_p2, %p1752_p13 }
  0x20   : > { %1468 = vmatpush1.msk.msra.mxu0 %vm293_vm4, %v1814_v18  ;;  %701 = vmatprep.subr.mxu1 %v1812_v6  ;;  %vm2728_vm14 = vcmp.eq.s32.totalorder %v2003_v24, %v1929_v11  ;;  %vm2729_vm15 = vcmp.eq.s32.totalorder %v2055_v29, %v1913_v5  ;;  %v2095_v33 = vadd.s32 1, %v2058_v30  ;;  %v2098_v34 = vadd.s32 32, %v1911_v4 }
  0x21   : > { %594 = vmatprep.subr.mxu0 %v1812_v6  ;;  %1491 = vmatpush1.msk.msra.mxu1 %vm401_vm5, %v1814_v18  ;;  %v2115_v35 = vadd.s32 1, %v2078_v32  ;;  %v2118_v36 = vadd.s32 24, %v1911_v4  ;;  %v2138_v38 = vadd.s32 16, %v1911_v4  ;;  %v2158_v40 = vadd.s32 8, %v1911_v4 }
  0x22   : > { %559 = vperm.xlu0 %1643, %v1994_v22   ;;  %1469 = vmatpush1.msk.msra.mxu0 %vm291_vm6, %v1814_v18  ;;  %v2135_v37 = vadd.s32 1, %v2098_v34  ;;  %v243_v41 = vadd.s32 136, %v1911_v4  ;;  %v2203_v45 = vadd.s32 128, %v1911_v4  ;;  %v2206_v46 = vadd.s32 1, %v1920_v8 }
  0x23   : > { %500 = vperm.xlu1 %1646, %v1994_v22   ;;  %596 = vmatprep.subr.mxu0 %v1812_v6  ;;  %v2155_v39 = vadd.s32 1, %v2118_v36  ;;  %v2176_v42 = vadd.s32 1, %v2138_v38  ;;  %v2193_v43 = vadd.s32 1, %v2158_v40  ;;  %v2216_v47 = vadd.s32 1, %v1911_v4 }
  0x24   : > { %1470 = vmatpush1.msk.msra.mxu0 %vm289_vm7, %v1814_v18  ;;  %703 = vmatprep.subr.mxu1 %v1812_v6  ;;  %v264_v44 = vadd.s32 1, %v243_v41  ;;  %v2239_v48 = vadd.s32 1, %v2203_v45 }
  0x25   : > { %598 = vmatprep.subr.mxu0 %v1812_v6  ;;  %1492 = vmatpush1.msk.msra.mxu1 %vm2741_vm8, %v1814_v18  ;;  %vm410_vm8 = vcmp.eq.s32.totalorder %v243_v41, %v2206_v46 }
  0x26   : > { %1471 = vmatpush1.msk.msra.mxu0 %vm2744_vm9, %v1814_v18  ;;  %705 = vmatprep.subr.mxu1 %v1812_v6  ;;  %vm375_vm9 = vcmp.eq.s32.totalorder %v1911_v4, %v1929_v11  ;;  %v2267_v50 = vsel %vm410_vm8, 1.0, %v1812_v6  ;;  %vm408_vm8 = vcmp.eq.s32.totalorder %v2203_v45, %v2206_v46 }
  0x27   : > { %600 = vmatprep.subr.mxu0 %v1812_v6  ;;  %1493 = vmatpush1.msk.msra.mxu1 %vm2734_vm10, %v1814_v18  ;;  %vm2740_vm10 = vcmp.eq.s32.totalorder %v2155_v39, %v1913_v5 }
  0x28   : > { %1472 = vmatpush1.msk.msra.mxu0 %vm2725_vm11, %v1814_v18  ;;  %707 = vmatprep.subr.mxu1 %v1812_v6  ;;  %vm2730_vm11 = vcmp.eq.s32.totalorder %v2021_v26, %v1929_v11 }
  0x29   : > { %602 = vmatprep.subr.mxu0 %v1812_v6  ;;  %1494 = vmatpush1.msk.msra.mxu1 %vm2726_vm12, %v1814_v18  ;;  %vm2731_vm12 = vcmp.eq.s32.totalorder %v2075_v31, %v1913_v5 }
  0x2a   : > { %1473 = vmatpush1.msk.msra.mxu0 %vm2727_vm13, %v1814_v18  ;;  %709 = vmatprep.subr.mxu1 %v1812_v6  ;;  %vm2732_vm13 = vcmp.eq.s32.totalorder %v2038_v28, %v1929_v11 }
  0x2b   : > { %604 = vmatprep.subr.mxu0 %v1812_v6  ;;  %1495 = vmatpush1.msk.msra.mxu1 %vm2728_vm14, %v1814_v18  ;;  %vm2733_vm14 = vcmp.eq.s32.totalorder %v2095_v33, %v1913_v5 }
  0x2c   : > { %1474 = vmatpush1.msk.msra.mxu0 %vm2729_vm15, %v1814_v18  ;;  %711 = vmatprep.subr.mxu1 %v1812_v6  ;;  %vm2738_vm15 = vcmp.eq.s32.totalorder %v2058_v30, %v1929_v11 }
  0x2d   : > { %606 = vmatprep.subr.mxu0 %v1812_v6  ;;  %1496 = vmatpush1.msk.msra.mxu1 %vm2730_vm11, %v1814_v18  ;;  %vm2735_vm11 = vcmp.eq.s32.totalorder %v2115_v35, %v1913_v5 }
  0x2e   : > { %1475 = vmatpush1.msk.msra.mxu0 %vm2731_vm12, %v1814_v18  ;;  %713 = vmatprep.subr.mxu1 %v1812_v6  ;;  %vm2736_vm12 = vcmp.eq.s32.totalorder %v2078_v32, %v1929_v11 }
  0x2f   : > { %608 = vmatprep.subr.mxu0 %v1812_v6  ;;  %1497 = vmatpush1.msk.msra.mxu1 %vm2732_vm13, %v1814_v18  ;;  %vm2737_vm13 = vcmp.eq.s32.totalorder %v2135_v37, %v1913_v5 }
  0x30   : > { %1476 = vmatpush1.msk.msra.mxu0 %vm2733_vm14, %v1814_v18  ;;  %715 = vmatprep.subr.mxu1 %v1812_v6  ;;  %vm2739_vm14 = vcmp.eq.s32.totalorder %v2098_v34, %v1929_v11 }
  0x31   : > { %610 = vmatprep.subr.mxu0 %v1812_v6  ;;  %1498 = vmatpush1.msk.msra.mxu1 %vm2738_vm15, %v1814_v18  ;;  %vm267_vm15 = vcmp.eq.s32.totalorder %v2193_v43, %v1913_v5 }
  0x32   : > { %1477 = vmatpush1.msk.msra.mxu0 %vm2735_vm11, %v1814_v18  ;;  %717 = vmatprep.subr.mxu1 %v1812_v6  ;;  %vm2742_vm11 = vcmp.eq.s32.totalorder %v2118_v36, %v1929_v11 }
  0x33   : > { %612 = vmatprep.subr.mxu0 %v1812_v6  ;;  %1499 = vmatpush1.msk.msra.mxu1 %vm2736_vm12, %v1814_v18  ;;  %vm2743_vm12 = vcmp.eq.s32.totalorder %v2176_v42, %v1913_v5 }
  0x34   : > { %1478 = vmatpush1.msk.msra.mxu0 %vm2737_vm13, %v1814_v18  ;;  %719 = vmatprep.subr.mxu1 %v1812_v6  ;;  %vm379_vm13 = vcmp.eq.s32.totalorder %v2138_v38, %v1929_v11 }
  0x35   : > { %614 = vmatprep.subr.mxu0 %v1812_v6  ;;  %1500 = vmatpush1.msk.msra.mxu1 %vm2739_vm14, %v1814_v18  ;;  %vm300_vm14 = vcmp.eq.s32.totalorder %v264_v44, %v1920_v8 }
  0x36   : > { %1479 = vmatpush1.msk.msra.mxu0 %vm2740_vm10, %v1814_v18  ;;  %721 = vmatprep.subr.mxu1 %v1812_v6  ;;  %vm377_vm10 = vcmp.eq.s32.totalorder %v2158_v40, %v1929_v11  ;;  %v2256_v49 = vsel %vm300_vm14, 1.0, %v1812_v6  ;;  %vm298_vm14 = vcmp.eq.s32.totalorder %v2239_v48, %v1920_v8 }
  0x37   : > { %616 = vmatprep.subr.mxu0 %v1812_v6  ;;  %1501 = vmatpush1.msk.msra.mxu1 %vm2742_vm11, %v1814_v18  ;;  %vm2745_vm11 = vcmp.eq.s32.totalorder %v2216_v47, %v1913_v5 }
  0x38   : > { %1480 = vmatpush1.msk.msra.mxu0 %vm2743_vm12, %v1814_v18  ;;  %723 = vmatprep.subr.mxu1 %v1812_v6  ;;  %vm583_vm12 = vcmask 1043456  }
  0x39   : > { %618 = vmatprep.subr.mxu0 %v1812_v6  ;;  %1502 = vmatpush1.msk.msra.mxu1 %vm379_vm13, %v1814_v18 }
  0x3a   : > { %1481 = vmatpush1.msk.msra.mxu0 %vm267_vm15, %v1814_v18  ;;  %725 = vmatprep.subr.mxu1 %v1812_v6 }
  0x3b   : > { %620 = vmatprep.subr.mxu0 %v1812_v6  ;;  %1503 = vmatpush1.msk.msra.mxu1 %vm377_vm10, %v1814_v18 }
  0x3c   : > { %1482 = vmatpush1.msk.msra.mxu0 %vm2745_vm11, %v1814_v18  ;;  %727 = vmatprep.subr.mxu1 %v1812_v6  ;;  %vm407_vm11 = vcmp.eq.s32.totalorder %v2203_v45, %v1929_v11 }
  0x3d   : > { %1483 = vmatprep.subr.msk.mxu0 %vm583_vm12, %v2256_v49  ;;  %1504 = vmatpush1.msk.msra.mxu1 %vm375_vm9, %v1814_v18 }
  0x3e   : > { %651 = vmatpush2.msra.mxu0 %v1812_v6  ;;  %1505 = vmatprep.subr.msk.mxu1 %vm583_vm12, %v2267_v50 }
  0x3f   : > { %1484 = vmatprep.subr.msk.mxu0 %vm298_vm14, %v1814_v18  ;;  %758 = vmatpush2.msra.mxu1 %v1812_v6 }
  0x40   : > { %653 = vmatpush2.msra.mxu0 %v1812_v6  ;;  %1506 = vmatprep.subr.msk.mxu1 %vm408_vm8, %v1814_v18 }
  0x41   : > { %1507 = vmatpush2.msk.msra.mxu1 %vm407_vm11, %v1814_v18  ;;  %1647 = vset.pattern.permute.xlu1 %v1815_v51 }
  0x42   : > { %523 = vperm.xlu1 %1647, %v1905_v1   ;;  %1648 = vset.pattern.permute.xlu0 %v1815_v51  ;;  %v510_v1 = vsub.s32 1, %v1911_v4 }
  0x43   : > { %527 = vperm.xlu0 %1648, %v1900_v0   ;;  %1512 = vmatprep.subr.msk.mxu0 %vm296_vm2, %v1814_v18  ;;  %v506_v0 = vsub.s32 0, %v1911_v4  ;;  %vm570_vm2 = vcmask 97280  }
  0x44   : > { %967 = vmatprep.subr.mxu1 %v1812_v6  ;;  %v2360_v12 = vrot.slane %v220_v2, %v510_v1 }
  0x46   : > { %1649 = vset.pattern.permute.xlu1 %v1811_v3 }
  0x47   : > { %800 = vperm.xlu1 %1649, %v794_v52   ;;  %1651 = vset.pattern.permute.xlu0 %v1811_v3 }
  0x48   : > { %805 = vperm.xlu0 %1651, %v795_v53  }
  0x4b   : > { %1650 = vset.pattern.permute.xlu1 %v1815_v51 }
  0x4c   : > { %531 = vperm.xlu1 %1650, %v1949_v16   ;;  %815 = vperm.xlu0 %1651, %v797_v54  }
  0x50   : > { %535 = vperm.xlu1 %1650, %v1994_v22   ;;  %1079 = vperm.xlu0 %1651, %v1065_v55  }
  0x54   : > { %1652 = vset.pattern.permute.xlu1 %v1811_v3  ;;  %1089 = vperm.xlu0 %1651, %v1067_v56   ;;  %v2358_v3 = vrot.slane %v220_v2, %v506_v0 }
  0x55   : > { %810 = vperm.xlu1 %1652, %v796_v57  }
  0x58   : > { %1099 = vperm.xlu0 %1651, %v1069_v58  }
  0x59   : > { %1074 = vperm.xlu1 %1652, %v1064_v59  }
  0x5c   : > { %1109 = vperm.xlu0 %1651, %v1071_v60  }
  0x5d   : > { %1084 = vperm.xlu1 %1652, %v1066_v61  }
  0x61   : > { %1094 = vperm.xlu1 %1652, %v1068_v62  }
  0x65   : > { %1104 = vperm.xlu1 %1652, %v1070_v63  }
  0x90   : > { %v486_v16 = vpop.permute.xlu0 %485  ;;  %v491_v22 = vpop.permute.xlu1 %490 }
  0x91   : > { %v514_v41 = vmul.f32 %v2358_v3, %v486_v16  ;;  %v517_v44 = vmul.f32 %v2360_v12, %v491_v22  ;;  %v515_v51 = vmul.f32 %v2360_v12, %v486_v16  ;;  %v516_v54 = vmul.f32 %v2358_v3, %v491_v22 }
  0x93   : > { %1485 = vmatprep.mubr.msk.f32.mxu0 %vm570_vm2, %v515_v51 }
  0x94   : > { %655 = vmatmul.mubr.f32.vlgmr.msra.gmra.mxu0 %v514_v41 }
  0x95   : > { %v548_v52 = vpop.permute.xlu0 %547  ;;  %1486 = vmatprep.mubr.msk.f32.mxu0 %vm570_vm2, %v517_v44  ;;  %v552_v53 = vpop.permute.xlu1 %551  ;;  %1513 = vmatpush1.msk.msra.mxu0 %vm295_vm3, %v1814_v18  ;;  %vm2750_vm3 = vcmp.eq.s32.totalorder %v1963_v19, %v1929_v11 }
  0x96   : > { %v562_v55 = vmul.f32 %v548_v52, %v2358_v3  ;;  %v565_v56 = vmul.f32 %v552_v53, %v2360_v12  ;;  %v563_v57 = vmul.f32 %v548_v52, %v2360_v12  ;;  %880 = vmatprep.subr.mxu0 %v1812_v6  ;;  %v564_v59 = vmul.f32 %v552_v53, %v2358_v3 }
  0x97   : > { %1514 = vmatpush1.msk.msra.mxu0 %vm293_vm4, %v1814_v18  ;;  %vm2751_vm4 = vcmp.eq.s32.totalorder %v2018_v25, %v1913_v5 }
  0x98   : > { %661 = vmatmul.mubr.f32.gmra.mxu0 %v516_v54  ;;  %1508 = vmatprep.mubr.msk.f32.mxu1 %vm570_vm2, %v563_v57 }
  0x99   : > { %v556_v13 = vpop.permute.xlu0 %555  ;;  %762 = vmatmul.mubr.f32.vlgmr.msra.gmra.mxu1 %v562_v55  ;;  %882 = vmatprep.subr.mxu0 %v1812_v6 }
  0x9a   : > { %v496_v58 = vpop.permute.xlu1 %495  ;;  %1509 = vmatprep.mubr.msk.f32.mxu1 %vm570_vm2, %v565_v56  ;;  %1535 = vmatpush1.msk.msra.mxu1 %vm405_vm0, %v1814_v18  ;;  %v567_v61 = vmul.f32 %v556_v13, %v2360_v12  ;;  %v566_v17 = vmul.f32 %v556_v13, %v2358_v3  ;;  %vm2748_vm0 = vcmp.eq.s32.totalorder %v2000_v23, %v1913_v5 }
  0x9b   : > { %v518_v14 = vmul.f32 %v2358_v3, %v496_v58  ;;  %v519_v60 = vmul.f32 %v2360_v12, %v496_v58  ;;  %969 = vmatprep.subr.mxu1 %v1812_v6  ;;  %1515 = vmatpush1.msk.msra.mxu0 %vm291_vm6, %v1814_v18  ;;  %vm2753_vm6 = vcmp.eq.s32.totalorder %v2035_v27, %v1913_v5 }
  0x9c   : > { %1536 = vmatpush1.msk.msra.mxu1 %vm403_vm1, %v1814_v18  ;;  %884 = vmatprep.subr.mxu0 %v1812_v6  ;;  %vm2749_vm1 = vcmp.eq.s32.totalorder %v1938_v15, %v1929_v11 }
  0x9d   : > { %v560_v7 = vpop.permute.xlu0 %559  ;;  %1487 = vmatprep.mubr.msk.f32.mxu0 %vm570_vm2, %v519_v60  ;;  %768 = vmatmul.mubr.f32.gmra.mxu1 %v564_v59 }
  0x9e   : > { %v501_v62 = vpop.permute.xlu1 %500  ;;  %667 = vmatmul.mubr.f32.gmra.mxu0 %v518_v14  ;;  %1510 = vmatprep.mubr.msk.f32.mxu1 %vm570_vm2, %v567_v61  ;;  %v569_v9 = vmul.f32 %v560_v7, %v2360_v12  ;;  %v568_v1 = vmul.f32 %v560_v7, %v2358_v3 }
  0x9f   : > { %v520_v63 = vmul.f32 %v2358_v3, %v501_v62  ;;  %v521_v0 = vmul.f32 %v2360_v12, %v501_v62  ;;  %971 = vmatprep.subr.mxu1 %v1812_v6  ;;  %1516 = vmatpush1.msk.msra.mxu0 %vm289_vm7, %v1814_v18  ;;  %vm2754_vm7 = vcmp.eq.s32.totalorder %v2003_v24, %v1929_v11 }
  0xa0   : > { %1537 = vmatpush1.msk.msra.mxu1 %vm401_vm5, %v1814_v18  ;;  %886 = vmatprep.subr.mxu0 %v1812_v6  ;;  %vm2752_vm5 = vcmp.eq.s32.totalorder %v1984_v21, %v1929_v11 }
  0xa1   : > { %1488 = vmatprep.mubr.msk.f32.mxu0 %vm570_vm2, %v521_v0  ;;  %774 = vmatmul.mubr.f32.gmra.mxu1 %v566_v17 }
  0xa2   : > { %673 = vmatmul.mubr.f32.gmra.mxu0 %v520_v63  ;;  %1511 = vmatprep.mubr.msk.f32.mxu1 %vm570_vm2, %v569_v9 }
  0xa3   : > { %973 = vmatprep.subr.mxu1 %v1812_v6  ;;  %1517 = vmatpush1.msk.msra.mxu0 %vm2748_vm0, %v1814_v18  ;;  %vm2755_vm0 = vcmp.eq.s32.totalorder %v2055_v29, %v1913_v5 }
  0xa4   : > { %1538 = vmatpush1.msk.msra.mxu1 %vm2749_vm1, %v1814_v18  ;;  %888 = vmatprep.subr.mxu0 %v1812_v6  ;;  %vm2756_vm1 = vcmp.eq.s32.totalorder %v2021_v26, %v1929_v11 }
  0xa5   : > { %780 = vmatmul.mubr.f32.gmra.mxu1 %v568_v1  ;;  %975 = vmatprep.subr.mxu1 %v1812_v6 }
  0xa6   : > { %1539 = vmatpush1.msk.msra.mxu1 %vm2750_vm3, %v1814_v18  ;;  %1518 = vmatpush1.msk.msra.mxu0 %vm2751_vm4, %v1814_v18  ;;  %vm2757_vm3 = vcmp.eq.s32.totalorder %v2075_v31, %v1913_v5  ;;  %vm2758_vm4 = vcmp.eq.s32.totalorder %v2038_v28, %v1929_v11 }
  0xa7   : > { %977 = vmatprep.subr.mxu1 %v1812_v6  ;;  %890 = vmatprep.subr.mxu0 %v1812_v6 }
  0xa8   : > { %1540 = vmatpush1.msk.msra.mxu1 %vm2752_vm5, %v1814_v18  ;;  %1519 = vmatpush1.msk.msra.mxu0 %vm2753_vm6, %v1814_v18  ;;  %vm2759_vm5 = vcmp.eq.s32.totalorder %v2095_v33, %v1913_v5  ;;  %vm2760_vm6 = vcmp.eq.s32.totalorder %v2058_v30, %v1929_v11 }
  0xa9   : > { %979 = vmatprep.subr.mxu1 %v1812_v6  ;;  %892 = vmatprep.subr.mxu0 %v1812_v6 }
  0xaa   : > { %1541 = vmatpush1.msk.msra.mxu1 %vm2754_vm7, %v1814_v18  ;;  %1520 = vmatpush1.msk.msra.mxu0 %vm2755_vm0, %v1814_v18  ;;  %vm2761_vm7 = vcmp.eq.s32.totalorder %v2115_v35, %v1913_v5  ;;  %vm2762_vm0 = vcmp.eq.s32.totalorder %v2078_v32, %v1929_v11 }
  0xab   : > { %981 = vmatprep.subr.mxu1 %v1812_v6  ;;  %894 = vmatprep.subr.mxu0 %v1812_v6 }
  0xac   : > { %1542 = vmatpush1.msk.msra.mxu1 %vm2756_vm1, %v1814_v18  ;;  %1521 = vmatpush1.msk.msra.mxu0 %vm2757_vm3, %v1814_v18  ;;  %vm2763_vm1 = vcmp.eq.s32.totalorder %v2135_v37, %v1913_v5  ;;  %vm2764_vm3 = vcmp.eq.s32.totalorder %v2098_v34, %v1929_v11 }
  0xad   : > { %983 = vmatprep.subr.mxu1 %v1812_v6  ;;  %896 = vmatprep.subr.mxu0 %v1812_v6 }
  0xae   : > { %1543 = vmatpush1.msk.msra.mxu1 %vm2758_vm4, %v1814_v18  ;;  %1522 = vmatpush1.msk.msra.mxu0 %vm2759_vm5, %v1814_v18  ;;  %vm2765_vm4 = vcmp.eq.s32.totalorder %v2155_v39, %v1913_v5  ;;  %vm2766_vm5 = vcmp.eq.s32.totalorder %v2118_v36, %v1929_v11 }
  0xaf   : > { %985 = vmatprep.subr.mxu1 %v1812_v6  ;;  %898 = vmatprep.subr.mxu0 %v1812_v6 }
  0xb0   : > { %1544 = vmatpush1.msk.msra.mxu1 %vm2760_vm6, %v1814_v18  ;;  %1523 = vmatpush1.msk.msra.mxu0 %vm2761_vm7, %v1814_v18  ;;  %vm2767_vm6 = vcmp.eq.s32.totalorder %v2176_v42, %v1913_v5  ;;  %vm2768_vm7 = vcmp.eq.s32.totalorder %v2216_v47, %v1913_v5 }
  0xb1   : > { %987 = vmatprep.subr.mxu1 %v1812_v6  ;;  %900 = vmatprep.subr.mxu0 %v1812_v6 }
  0xb2   : > { %1545 = vmatpush1.msk.msra.mxu1 %vm2762_vm0, %v1814_v18  ;;  %1524 = vmatpush1.msk.msra.mxu0 %vm2763_vm1, %v1814_v18 }
  0xb3   : > { %989 = vmatprep.subr.mxu1 %v1812_v6  ;;  %902 = vmatprep.subr.mxu0 %v1812_v6 }
  0xb4   : > { %1546 = vmatpush1.msk.msra.mxu1 %vm2764_vm3, %v1814_v18  ;;  %1525 = vmatpush1.msk.msra.mxu0 %vm2765_vm4, %v1814_v18 }
  0xb5   : > { %991 = vmatprep.subr.mxu1 %v1812_v6  ;;  %904 = vmatprep.subr.mxu0 %v1812_v6 }
  0xb6   : > { %1547 = vmatpush1.msk.msra.mxu1 %vm2766_vm5, %v1814_v18  ;;  %1526 = vmatpush1.msk.msra.mxu0 %vm2767_vm6, %v1814_v18 }
  0xb7   : > { %993 = vmatprep.subr.mxu1 %v1812_v6  ;;  %906 = vmatprep.subr.mxu0 %v1812_v6 }
  0xb8   : > { %1548 = vmatpush1.msk.msra.mxu1 %vm379_vm13, %v1814_v18  ;;  %1527 = vmatpush1.msk.msra.mxu0 %vm267_vm15, %v1814_v18 }
  0xb9   : > { %995 = vmatprep.subr.mxu1 %v1812_v6  ;;  %908 = vmatprep.subr.mxu0 %v1812_v6 }
  0xba   : > { %1549 = vmatpush1.msk.msra.mxu1 %vm377_vm10, %v1814_v18  ;;  %1528 = vmatpush1.msk.msra.mxu0 %vm2768_vm7, %v1814_v18 }
  0xbb   : > { %997 = vmatprep.subr.mxu1 %v1812_v6  ;;  %1529 = vmatprep.subr.msk.mxu0 %vm583_vm12, %v2256_v49 }
  0xbc   : > { %1550 = vmatpush1.msk.msra.mxu1 %vm375_vm9, %v1814_v18  ;;  %939 = vmatpush2.msra.mxu0 %v1812_v6  ;;  %vm1112_vm9 = vcmask 785408  }
  0xbd   : > { %1551 = vmatprep.subr.msk.mxu1 %vm583_vm12, %v2267_v50  ;;  %1530 = vmatprep.subr.msk.mxu0 %vm298_vm14, %v1814_v18  ;;  %v524_v4 = vpop.permute.xlu1 %523 }
  0xbe   : > { %1028 = vmatpush2.msra.mxu1 %v1812_v6  ;;  %941 = vmatpush2.msra.mxu0 %v1812_v6  ;;  %v538_v10 = vmul.f32 %v524_v4, %v2358_v3  ;;  %v528_v19 = vpop.permute.xlu0 %527  ;;  %v539_v20 = vmul.f32 %v524_v4, %v2360_v12 }
  0xbf   : > { %1552 = vmatprep.subr.msk.mxu1 %vm408_vm8, %v1814_v18  ;;  %v540_v21 = vmul.f32 %v528_v19, %v2358_v3  ;;  %v541_v27 = vmul.f32 %v528_v19, %v2360_v12 }
  0xc0   : > { %1553 = vmatpush2.msk.msra.mxu1 %vm407_vm11, %v1814_v18 }
  0xc2   : > { %v801_v5 = vpop.permute.xlu1 %800 }
  0xc3   : > { %v806_v43 = vpop.permute.xlu0 %805 }
  0xc7   : > { %v532_v23 = vpop.permute.xlu1 %531  ;;  %v816_v0 = vpop.permute.xlu0 %815 }
  0xc8   : > { %v542_v18 = vmul.f32 %v532_v23, %v2358_v3  ;;  %v543_v42 = vmul.f32 %v532_v23, %v2360_v12 }
  0xcb   : > { %v536_v35 = vpop.permute.xlu1 %535 }
  0xcc   : > { %v544_v16 = vmul.f32 %v536_v35, %v2358_v3  ;;  %v545_v54 = vmul.f32 %v536_v35, %v2360_v12 }
  0xd0   : > { %v811_v13 = vpop.permute.xlu1 %810 }
 0x154   : > { %v656_v8 = vpop.f32.mrf.mxu0 }
 0x155   : > { %v657_v24 = vadd.f32 %v656_v8, %v538_v10 }
 0x156   : > { %v658_v15 = vpop.f32.mrf.mxu0 }
 0x157   : > { %v659_v28 = vadd.f32 %v658_v15, %v539_v20 }
 0x158   : > { %v662_v25 = vpop.f32.mrf.mxu0 }
 0x159   : > { %v763_v26 = vpop.f32.mrf.mxu1  ;;  %v663_v31 = vadd.f32 %v662_v25, %v540_v21 }
 0x15a   : > { %v786_v11 = vadd.f32 %v763_v26, %v657_v24  ;;  %v664_v29 = vpop.f32.mrf.mxu0 }
 0x15b   : > { %v765_v30 = vpop.f32.mrf.mxu1  ;;  %v665_v37 = vadd.f32 %v664_v29, %v541_v27 }
 0x15c   : > { %v818_v32 = vadd.f32 %v801_v5, %v786_v11  ;;  %v787_v33 = vadd.f32 %v765_v30, %v659_v28 }
 0x15d   : > { %v769_v34 = vpop.f32.mrf.mxu1 }
 0x15e   : > { %v826_v36 = vsub.f32 0.0, %v818_v32  ;;  %v819_v38 = vadd.f32 %v801_v5, %v787_v33  ;;  %v788_v39 = vadd.f32 %v769_v34, %v663_v31  ;;  %v668_v40 = vpop.f32.mrf.mxu0 }
 0x15f   : > { %v669_v45 = vadd.f32 %v668_v40, %v542_v18  ;;  %v771_v46 = vpop.f32.mrf.mxu1 }
 0x160   : > { %v834_v47 = vmul.f32 1.442695, %v826_v36  ;;  %v827_v48 = vsub.f32 0.0, %v819_v38  ;;  %v820_v49 = vadd.f32 %v806_v43, %v788_v39  ;;  %v789_v50 = vadd.f32 %v771_v46, %v665_v37  ;;  %v670_v2 = vpop.f32.mrf.mxu0 }
 0x161   : > { %v671_v22 = vadd.f32 %v670_v2, %v543_v42  ;;  %v775_v41 = vpop.f32.mrf.mxu1 }
 0x162   : > { %1653 = vpow2.f32 %v834_v47  ;;  %v836_v44 = vmul.f32 1.442695, %v827_v48  ;;  %v828_v51 = vsub.f32 0.0, %v820_v49  ;;  %v821_v52 = vadd.f32 %v806_v43, %v789_v50  ;;  %v674_v53 = vpop.f32.mrf.mxu0 }
 0x163   : > { %v790_v55 = vadd.f32 %v775_v41, %v669_v45  ;;  %v675_v56 = vadd.f32 %v674_v53, %v544_v16  ;;  %v777_v57 = vpop.f32.mrf.mxu1 }
 0x164   : > { %1655 = vpow2.f32 %v836_v44  ;;  %v838_v58 = vmul.f32 1.442695, %v828_v51  ;;  %v829_v59 = vsub.f32 0.0, %v821_v52  ;;  %v791_v14 = vadd.f32 %v777_v57, %v671_v22  ;;  %v676_v60 = vpop.f32.mrf.mxu0 }
 0x165   : > { %v822_v61 = vadd.f32 %v811_v13, %v790_v55  ;;  %v677_v3 = vadd.f32 %v676_v60, %v545_v54  ;;  %v781_v7 = vpop.f32.mrf.mxu1  ;;  %v1061_v60 = vld [vmem:[%s2722_s3 + $0x28] sm:$0xff] }
 0x166   : > { %1657 = vpow2.f32 %v838_v58  ;;  %v840_v62 = vmul.f32 1.442695, %v829_v59  ;;  %v823_v17 = vadd.f32 %v811_v13, %v791_v14  ;;  %v792_v63 = vadd.f32 %v781_v7, %v675_v56  ;;  %v1056_v58 = vld [vmem:[%s2722_s3] sm:$0xff]  ;;  %v1057_v14 = vld [vmem:[%s2722_s3 + $0x8] sm:$0xff]  ;;  %v1059_v7 = vld [vmem:[%s2722_s3 + $0x18] sm:$0xff] }
 0x167   : > { %v830_v9 = vsub.f32 0.0, %v822_v61  ;;  %v783_v1 = vpop.f32.mrf.mxu1  ;;  %v1060_v59 = vld [vmem:[%s2722_s3 + $0x20] sm:$0xff]  ;;  %v1058_v61 = vld [vmem:[%s2722_s3 + $0x10] sm:$0xff] }
 0x168   : > { %1659 = vpow2.f32 %v840_v62  ;;  %v831_v12 = vsub.f32 0.0, %v823_v17  ;;  %v824_v4 = vadd.f32 %v816_v0, %v792_v63  ;;  %v793_v5 = vadd.f32 %v783_v1, %v677_v3  ;;  %v1062_v3 = vld [vmem:[%s2722_s3 + $0x30] sm:$0xff]  ;;  %v1063_v62 = vld [vmem:[%s2722_s3 + $0x38] sm:$0xff]  ;;  %v1075_v17 = vpop.permute.xlu1 %1074  ;;  %v1080_v63 = vpop.permute.xlu0 %1079 }
 0x169   : > { %v842_v10 = vmul.f32 1.442695, %v830_v9 }
 0x16a   : > { %v844_v8 = vmul.f32 1.442695, %v831_v12  ;;  %v832_v15 = vsub.f32 0.0, %v824_v4  ;;  %v825_v19 = vadd.f32 %v816_v0, %v793_v5 }
 0x16b   : > { %1661 = vpow2.f32 %v842_v10 }
 0x16c   : > { %1663 = vpow2.f32 %v844_v8  ;;  %v846_v20 = vmul.f32 1.442695, %v832_v15  ;;  %v833_v21 = vsub.f32 0.0, %v825_v19  ;;  %v1085_v0 = vpop.permute.xlu1 %1084  ;;  %v2635_v9 = vpop.permute.xlu0 %1089 }
 0x16e   : > { %1665 = vpow2.f32 %v846_v20  ;;  %v848_v23 = vmul.f32 1.442695, %v833_v21 }
 0x16f   : > { %v1654_v24 = vpop.eup %1653 }
 0x170   : > { %1667 = vpow2.f32 %v848_v23  ;;  %v850_v26 = vadd.f32 1.0, %v1654_v24  ;;  %v1095_v1 = vpop.permute.xlu1 %1094 }
 0x171   : > { %v1656_v25 = vpop.eup %1655 }
 0x172   : > { %v851_v27 = vadd.f32 1.0, %v1656_v25  ;;  %v1100_v25 = vpop.permute.xlu0 %1099 }
 0x173   : > { %v1658_v28 = vpop.eup %1657 }
 0x174   : > { %1669 = vrcp.f32 %v851_v27  ;;  %v852_v18 = vadd.f32 1.0, %v1658_v28 }
 0x175   : > { %v1660_v11 = vpop.eup %1659  ;;  %1671 = vrcp.f32 %v850_v26 }
 0x176   : > { %v853_v29 = vadd.f32 1.0, %v1660_v11 }
 0x178   : > { %v1662_v30 = vpop.eup %1661  ;;  %1673 = vrcp.f32 %v853_v29 }
 0x179   : > { %v1664_v31 = vpop.eup %1663  ;;  %1675 = vrcp.f32 %v852_v18  ;;  %v854_v32 = vadd.f32 1.0, %v1662_v30 }
 0x17a   : > { %v855_v33 = vadd.f32 1.0, %v1664_v31 }
 0x17b   : > { %v1666_v34 = vpop.eup %1665 }
 0x17c   : > { %1677 = vrcp.f32 %v855_v33  ;;  %v856_v36 = vadd.f32 1.0, %v1666_v34 }
 0x17d   : > { %v1668_v35 = vpop.eup %1667  ;;  %1679 = vrcp.f32 %v854_v32  ;;  %v1105_v32 = vpop.permute.xlu1 %1104 }
 0x17e   : > { %v857_v37 = vadd.f32 1.0, %v1668_v35 }
 0x180   : > { %1681 = vrcp.f32 %v857_v37 }
 0x181   : > { %v2571_v38 = vpop.eup %1669  ;;  %1683 = vrcp.f32 %v856_v36 }
 0x182   : > { %v2573_v39 = vpop.eup %1671  ;;  %1531 = vmatprep.mubr.msk.f32.mxu0 %vm570_vm2, %v2571_v38  ;;  %1554 = vmatprep.mubr.msk.f32.mxu1 %vm570_vm2, %v2571_v38 }
 0x183   : > { %943 = vmatmul.mubr.f32.vlgmr.msra.gmra.mxu0 %v2573_v39  ;;  %1032 = vmatmul.mubr.f32.vlgmr.msra.gmra.mxu1 %v2573_v39 }
 0x185   : > { %v1674_v40 = vpop.eup %1673 }
 0x186   : > { %v1676_v42 = vpop.eup %1675  ;;  %1532 = vmatprep.mubr.msk.f32.mxu0 %vm570_vm2, %v1674_v40  ;;  %1555 = vmatprep.mubr.msk.f32.mxu1 %vm570_vm2, %v1674_v40 }
 0x187   : > { %949 = vmatmul.mubr.f32.gmra.mxu0 %v1676_v42  ;;  %1038 = vmatmul.mubr.f32.gmra.mxu1 %v1676_v42 }
 0x189   : > { %v1678_v43 = vpop.eup %1677 }
 0x18a   : > { %v1680_v45 = vpop.eup %1679  ;;  %1533 = vmatprep.mubr.msk.f32.mxu0 %vm570_vm2, %v1678_v43  ;;  %1556 = vmatprep.mubr.msk.f32.mxu1 %vm570_vm2, %v1678_v43 }
 0x18b   : > { %955 = vmatmul.mubr.f32.gmra.mxu0 %v1680_v45  ;;  %1044 = vmatmul.mubr.f32.gmra.mxu1 %v1680_v45 }
 0x18d   : > { %v1682_v46 = vpop.eup %1681 }
 0x18e   : > { %v1684_v47 = vpop.eup %1683  ;;  %1534 = vmatprep.mubr.msk.f32.mxu0 %vm570_vm2, %v1682_v46  ;;  %1557 = vmatprep.mubr.msk.f32.mxu1 %vm570_vm2, %v1682_v46 }
 0x18f   : > { %961 = vmatmul.mubr.f32.gmra.mxu0 %v1684_v47  ;;  %1050 = vmatmul.mubr.f32.gmra.mxu1 %v1684_v47 }
 0x190   : > { %1201 = vmatprep.mubr.f32.mxu0 %v1812_v6  ;;  %1225 = vmatprep.mubr.f32.mxu1 %v1812_v6 }
 0x243   : > { %v1033_v48 = vpop.f32.mrf.mxu1  ;;  %v2589_v49 = vpop.f32.mrf.mxu0 }
 0x245   : > { %v1035_v50 = vpop.f32.mrf.mxu1  ;;  %v946_v16 = vpop.f32.mrf.mxu0 }
 0x247   : > { %v1039_v2 = vpop.f32.mrf.mxu1  ;;  %v950_v44 = vpop.f32.mrf.mxu0 }
 0x249   : > { %v1041_v22 = vpop.f32.mrf.mxu1  ;;  %v952_v53 = vpop.f32.mrf.mxu0 }
 0x24b   : > { %v1045_v41 = vpop.f32.mrf.mxu1  ;;  %v956_v55 = vpop.f32.mrf.mxu0 }
 0x24d   : > { %v1047_v51 = vpop.f32.mrf.mxu1  ;;  %v958_v56 = vpop.f32.mrf.mxu0 }
 0x24f   : > { %v1051_v52 = vpop.f32.mrf.mxu1  ;;  %v962_v57 = vpop.f32.mrf.mxu0 }
 0x251   : > { %v1053_v54 = vpop.f32.mrf.mxu1  ;;  %v964_v13 = vpop.f32.mrf.mxu0 }
 0x252   : > { %1145 = vmatprep.subr.mxu0 %v1053_v54  ;;  %1572 = vmatprep.subr.mxu1 %v1053_v54  ;;  %v1110_v54 = vpop.permute.xlu0 %1109 }
 0x253   : > { %1146 = vmatpush1.msra.mxu0 %v1051_v52  ;;  %1584 = vmatpush1.msra.mxu1 %v1051_v52 }
 0x254   : > { %1147 = vmatprep.subr.mxu0 %v1047_v51  ;;  %1573 = vmatprep.subr.mxu1 %v1047_v51 }
 0x255   : > { %1148 = vmatpush1.msra.mxu0 %v1045_v41  ;;  %1585 = vmatpush1.msra.mxu1 %v1045_v41 }
 0x256   : > { %1149 = vmatprep.subr.mxu0 %v1041_v22  ;;  %1574 = vmatprep.subr.mxu1 %v1041_v22 }
 0x257   : > { %1150 = vmatpush1.msra.mxu0 %v1039_v2  ;;  %1586 = vmatpush1.msra.mxu1 %v1039_v2 }
 0x258   : > { %1151 = vmatprep.subr.mxu0 %v1035_v50  ;;  %1575 = vmatprep.subr.mxu1 %v1035_v50 }
 0x259   : > { %1152 = vmatpush1.msra.mxu0 %v1033_v48  ;;  %1587 = vmatpush1.msra.mxu1 %v1033_v48 }
 0x25a   : > { %1153 = vmatprep.subr.mxu0 %v1682_v46  ;;  %1576 = vmatprep.subr.mxu1 %v1682_v46 }
 0x25b   : > { %1154 = vmatpush1.msra.mxu0 %v1684_v47  ;;  %1588 = vmatpush1.msra.mxu1 %v1684_v47 }
 0x25c   : > { %1155 = vmatprep.subr.mxu0 %v1678_v43  ;;  %1577 = vmatprep.subr.mxu1 %v1678_v43 }
 0x25d   : > { %1156 = vmatpush1.msra.mxu0 %v1680_v45  ;;  %1589 = vmatpush1.msra.mxu1 %v1680_v45 }
 0x25e   : > { %1157 = vmatprep.subr.mxu0 %v1674_v40  ;;  %1578 = vmatprep.subr.mxu1 %v1674_v40 }
 0x25f   : > { %1158 = vmatpush1.msra.mxu0 %v1676_v42  ;;  %1590 = vmatpush1.msra.mxu1 %v1676_v42 }
 0x260   : > { %1159 = vmatprep.subr.mxu0 %v2571_v38  ;;  %1579 = vmatprep.subr.mxu1 %v2571_v38 }
 0x261   : > { %1160 = vmatpush1.msra.mxu0 %v2573_v39  ;;  %1591 = vmatpush1.msra.mxu1 %v2573_v39 }
 0x262   : > { %1161 = vmatprep.subr.mxu0 %v964_v13  ;;  %1580 = vmatprep.subr.mxu1 %v964_v13 }
 0x263   : > { %1162 = vmatpush1.msra.mxu0 %v962_v57  ;;  %1592 = vmatpush1.msra.mxu1 %v962_v57 }
 0x264   : > { %1163 = vmatprep.subr.mxu0 %v958_v56  ;;  %1581 = vmatprep.subr.mxu1 %v958_v56 }
 0x265   : > { %1164 = vmatpush1.msra.mxu0 %v956_v55  ;;  %1593 = vmatpush1.msra.mxu1 %v956_v55 }
 0x266   : > { %1165 = vmatprep.subr.mxu0 %v952_v53  ;;  %1582 = vmatprep.subr.mxu1 %v952_v53 }
 0x267   : > { %1166 = vmatpush1.msra.mxu0 %v950_v44  ;;  %1594 = vmatpush1.msra.mxu1 %v950_v44 }
 0x268   : > { %1167 = vmatprep.subr.mxu0 %v946_v16  ;;  %1583 = vmatprep.subr.mxu1 %v946_v16 }
 0x269   : > { %1168 = vmatpush1.msra.mxu0 %v2589_v49  ;;  %1595 = vmatpush1.msra.mxu1 %v2589_v49 }
 0x26a   : > { %1558 = vmatmul.mubr.msk.f32.vlgmr.msra.gmra.mxu0 %vm1112_vm9, %v1056_v58  ;;  %1562 = vmatmul.mubr.msk.f32.vlgmr.msra.gmra.mxu1 %vm1112_vm9, %v1060_v59 }
 0x26b   : > { %1207 = vmatprep.mubr.f32.mxu0 %v1812_v6  ;;  %1231 = vmatprep.mubr.f32.mxu1 %v1812_v6 }
 0x26e   : > { %1559 = vmatmul.mubr.msk.f32.gmra.mxu0 %vm1112_vm9, %v1057_v14  ;;  %1563 = vmatmul.mubr.msk.f32.gmra.mxu1 %vm1112_vm9, %v1061_v60 }
 0x26f   : > { %1213 = vmatprep.mubr.f32.mxu0 %v1812_v6  ;;  %1237 = vmatprep.mubr.f32.mxu1 %v1812_v6 }
 0x272   : > { %1560 = vmatmul.mubr.msk.f32.gmra.mxu0 %vm1112_vm9, %v1058_v61  ;;  %1564 = vmatmul.mubr.msk.f32.gmra.mxu1 %vm1112_vm9, %v1062_v3 }
 0x273   : > { %1219 = vmatprep.mubr.f32.mxu0 %v1812_v6  ;;  %1243 = vmatprep.mubr.f32.mxu1 %v1812_v6 }
 0x276   : > { %1561 = vmatmul.mubr.msk.f32.gmra.mxu0 %vm1112_vm9, %v1059_v7  ;;  %1565 = vmatmul.mubr.msk.f32.gmra.mxu1 %vm1112_vm9, %v1063_v62 }
 0x32a   : > { %v1203_v12 = vpop.f32.mrf.mxu0  ;;  %v1227_v6 = vpop.f32.mrf.mxu1 }
 0x32b   : > { %v1204_v4 = vadd.f32 %v1203_v12, %v1075_v17  ;;  %v1228_v5 = vadd.f32 %v1227_v6, %v1095_v1 }
 0x32c   : > { %v1205_v10 = vpop.f32.mrf.mxu0  ;;  %v1229_v8 = vpop.f32.mrf.mxu1 }
 0x32d   : > { %v1250_v15 = vsub.f32 0.0, %v1204_v4  ;;  %v1258_v19 = vsub.f32 0.0, %v1228_v5  ;;  %v1206_v20 = vadd.f32 %v1205_v10, %v1075_v17  ;;  %v1230_v21 = vadd.f32 %v1229_v8, %v1095_v1 }
 0x32e   : > { %v1209_v23 = vpop.f32.mrf.mxu0  ;;  %v1233_v24 = vpop.f32.mrf.mxu1 }
 0x32f   : > { %v1266_v26 = vmul.f32 1.442695, %v1250_v15  ;;  %v1282_v27 = vmul.f32 1.442695, %v1258_v19  ;;  %v1251_v28 = vsub.f32 0.0, %v1206_v20  ;;  %v1259_v11 = vsub.f32 0.0, %v1230_v21 }
 0x330   : > { %v1210_v18 = vadd.f32 %v1209_v23, %v1080_v63  ;;  %v1234_v29 = vadd.f32 %v1233_v24, %v1100_v25  ;;  %v1211_v30 = vpop.f32.mrf.mxu0  ;;  %v1235_v31 = vpop.f32.mrf.mxu1 }
 0x331   : > { %1685 = vpow2.f32 %v1266_v26  ;;  %v1268_v33 = vmul.f32 1.442695, %v1251_v28  ;;  %v1284_v34 = vmul.f32 1.442695, %v1259_v11  ;;  %v1212_v35 = vadd.f32 %v1211_v30, %v1080_v63 }
 0x332   : > { %1687 = vpow2.f32 %v1282_v27  ;;  %v1252_v36 = vsub.f32 0.0, %v1210_v18  ;;  %v1260_v37 = vsub.f32 0.0, %v1234_v29  ;;  %v1236_v38 = vadd.f32 %v1235_v31, %v1100_v25  ;;  %v1215_v39 = vpop.f32.mrf.mxu0  ;;  %v1239_v40 = vpop.f32.mrf.mxu1 }
 0x333   : > { %1689 = vpow2.f32 %v1268_v33  ;;  %v1253_v42 = vsub.f32 0.0, %v1212_v35  ;;  %v1216_v43 = vadd.f32 %v1215_v39, %v1085_v0  ;;  %v1240_v45 = vadd.f32 %v1239_v40, %v1105_v32 }
 0x334   : > { %1691 = vpow2.f32 %v1284_v34  ;;  %v1270_v46 = vmul.f32 1.442695, %v1252_v36  ;;  %v1286_v47 = vmul.f32 1.442695, %v1260_v37  ;;  %v1261_v48 = vsub.f32 0.0, %v1236_v38  ;;  %v1217_v49 = vpop.f32.mrf.mxu0  ;;  %v1241_v50 = vpop.f32.mrf.mxu1 }
 0x335   : > { %v1272_v2 = vmul.f32 1.442695, %v1253_v42  ;;  %v1254_v16 = vsub.f32 0.0, %v1216_v43  ;;  %v1262_v22 = vsub.f32 0.0, %v1240_v45  ;;  %v1218_v41 = vadd.f32 %v1217_v49, %v1085_v0 }
 0x336   : > { %1693 = vpow2.f32 %v1270_v46  ;;  %v1288_v44 = vmul.f32 1.442695, %v1261_v48  ;;  %v1242_v51 = vadd.f32 %v1241_v50, %v1105_v32  ;;  %v1221_v52 = vpop.f32.mrf.mxu0  ;;  %v1245_v53 = vpop.f32.mrf.mxu1 }
 0x337   : > { %1695 = vpow2.f32 %v1286_v47  ;;  %v1274_v55 = vmul.f32 1.442695, %v1254_v16  ;;  %v1290_v56 = vmul.f32 1.442695, %v1262_v22  ;;  %v1255_v57 = vsub.f32 0.0, %v1218_v41 }
 0x338   : > { %1697 = vpow2.f32 %v1272_v2  ;;  %v1263_v13 = vsub.f32 0.0, %v1242_v51  ;;  %v1222_v58 = vadd.f32 %v1221_v52, %v2635_v9  ;;  %v1246_v59 = vadd.f32 %v1245_v53, %v1110_v54  ;;  %v1223_v14 = vpop.f32.mrf.mxu0  ;;  %v1247_v60 = vpop.f32.mrf.mxu1 }
 0x339   : > { %1699 = vpow2.f32 %v1288_v44  ;;  %v1276_v61 = vmul.f32 1.442695, %v1255_v57  ;;  %v1224_v3 = vadd.f32 %v1223_v14, %v2635_v9  ;;  %v1248_v7 = vadd.f32 %v1247_v60, %v1110_v54 }
 0x33a   : > { %1701 = vpow2.f32 %v1274_v55  ;;  %v1292_v62 = vmul.f32 1.442695, %v1263_v13  ;;  %v1256_v17 = vsub.f32 0.0, %v1222_v58  ;;  %v1264_v63 = vsub.f32 0.0, %v1246_v59 }
 0x33b   : > { %1703 = vpow2.f32 %v1290_v56  ;;  %v1257_v0 = vsub.f32 0.0, %v1224_v3  ;;  %v1265_v4 = vsub.f32 0.0, %v1248_v7 }
 0x33c   : > { %1705 = vpow2.f32 %v1276_v61  ;;  %v1278_v1 = vmul.f32 1.442695, %v1256_v17  ;;  %v1294_v12 = vmul.f32 1.442695, %v1264_v63 }
 0x33d   : > { %1707 = vpow2.f32 %v1292_v62  ;;  %v1280_v6 = vmul.f32 1.442695, %v1257_v0  ;;  %v1296_v21 = vmul.f32 1.442695, %v1265_v4 }
 0x33e   : > { %v1686_v5 = vpop.eup %1685  ;;  %1709 = vpow2.f32 %v1278_v1 }
 0x33f   : > { %v1688_v10 = vpop.eup %1687  ;;  %v1298_v8 = vadd.f32 1.0, %v1686_v5  ;;  %1711 = vpow2.f32 %v1294_v12 }
 0x340   : > { %v1690_v15 = vpop.eup %1689  ;;  %v1306_v9 = vadd.f32 1.0, %v1688_v10  ;;  %1713 = vpow2.f32 %v1280_v6 }
 0x341   : > { %v1692_v19 = vpop.eup %1691  ;;  %1715 = vrcp.f32 %v1298_v8  ;;  %v1299_v20 = vadd.f32 1.0, %v1690_v15 }
 0x342   : > { %1717 = vrcp.f32 %v1306_v9  ;;  %v1307_v23 = vadd.f32 1.0, %v1692_v19 }
 0x343   : > { %v1694_v24 = vpop.eup %1693  ;;  %1719 = vrcp.f32 %v1299_v20 }
 0x344   : > { %v1696_v25 = vpop.eup %1695  ;;  %1721 = vrcp.f32 %v1307_v23  ;;  %v1300_v26 = vadd.f32 1.0, %v1694_v24 }
 0x345   : > { %v1698_v27 = vpop.eup %1697  ;;  %v1308_v28 = vadd.f32 1.0, %v1696_v25  ;;  %1723 = vpow2.f32 %v1296_v21 }
 0x346   : > { %v1700_v11 = vpop.eup %1699  ;;  %1725 = vrcp.f32 %v1300_v26  ;;  %v1301_v18 = vadd.f32 1.0, %v1698_v27 }
 0x347   : > { %v1702_v29 = vpop.eup %1701  ;;  %1727 = vrcp.f32 %v1308_v28  ;;  %v1309_v30 = vadd.f32 1.0, %v1700_v11 }
 0x348   : > { %v1704_v31 = vpop.eup %1703  ;;  %1729 = vrcp.f32 %v1301_v18  ;;  %v1302_v32 = vadd.f32 1.0, %v1702_v29 }
 0x349   : > { %v1706_v33 = vpop.eup %1705  ;;  %1731 = vrcp.f32 %v1309_v30  ;;  %v1310_v34 = vadd.f32 1.0, %v1704_v31 }
 0x34a   : > { %v1708_v35 = vpop.eup %1707  ;;  %1733 = vrcp.f32 %v1302_v32  ;;  %v1303_v36 = vadd.f32 1.0, %v1706_v33 }
 0x34b   : > { %v1710_v37 = vpop.eup %1709  ;;  %1735 = vrcp.f32 %v1310_v34  ;;  %v1311_v38 = vadd.f32 1.0, %v1708_v35 }
 0x34c   : > { %v1712_v39 = vpop.eup %1711  ;;  %1737 = vrcp.f32 %v1303_v36  ;;  %v1304_v40 = vadd.f32 1.0, %v1710_v37 }
 0x34d   : > { %v1714_v42 = vpop.eup %1713  ;;  %1739 = vrcp.f32 %v1311_v38  ;;  %v1312_v43 = vadd.f32 1.0, %v1712_v39 }
 0x34e   : > { %v1716_v45 = vpop.eup %1715  ;;  %1741 = vrcp.f32 %v1304_v40  ;;  %v1305_v46 = vadd.f32 1.0, %v1714_v42 }
 0x34f   : > { %v1718_v47 = vpop.eup %1717  ;;  %1330 = vst [vmem:[%s2642_s12] sm:$0xff] %v1716_v45  ;;  %1743 = vrcp.f32 %v1312_v43 }
 0x350   : > { %v1720_v48 = vpop.eup %1719  ;;  %1338 = vst [vmem:[%s2642_s12 + $0x40] sm:$0xff] %v1718_v47  ;;  %1745 = vrcp.f32 %v1305_v46 }
 0x351   : > { %v1722_v49 = vpop.eup %1721  ;;  %1331 = vst.msk [vmem:[%s2642_s12 + $0x8] sm:$0xff] %vm570_vm2, %v1720_v48 }
 0x352   : > { %v1724_v50 = vpop.eup %1723  ;;  %1339 = vst.msk [vmem:[%s2642_s12 + $0x48] sm:$0xff] %vm570_vm2, %v1722_v49 }
 0x353   : > { %v1726_v2 = vpop.eup %1725  ;;  %v1313_v16 = vadd.f32 1.0, %v1724_v50 }
 0x354   : > { %v1728_v22 = vpop.eup %1727  ;;  %1332 = vst [vmem:[%s2642_s12 + $0x10] sm:$0xff] %v1726_v2 }
 0x355   : > { %v1730_v41 = vpop.eup %1729  ;;  %1340 = vst [vmem:[%s2642_s12 + $0x50] sm:$0xff] %v1728_v22  ;;  %1747 = vrcp.f32 %v1313_v16 }
 0x356   : > { %v1732_v44 = vpop.eup %1731  ;;  %1333 = vst.msk [vmem:[%s2642_s12 + $0x18] sm:$0xff] %vm570_vm2, %v1730_v41 }
 0x357   : > { %v1734_v51 = vpop.eup %1733  ;;  %1341 = vst.msk [vmem:[%s2642_s12 + $0x58] sm:$0xff] %vm570_vm2, %v1732_v44 }
 0x358   : > { %v1736_v52 = vpop.eup %1735  ;;  %1334 = vst [vmem:[%s2642_s12 + $0x20] sm:$0xff] %v1734_v51 }
 0x359   : > { %v1738_v53 = vpop.eup %1737  ;;  %1342 = vst [vmem:[%s2642_s12 + $0x60] sm:$0xff] %v1736_v52 }
 0x35a   : > { %v1740_v54 = vpop.eup %1739  ;;  %1335 = vst.msk [vmem:[%s2642_s12 + $0x28] sm:$0xff] %vm570_vm2, %v1738_v53 }
 0x35b   : > { %v1742_v55 = vpop.eup %1741  ;;  %1343 = vst.msk [vmem:[%s2642_s12 + $0x68] sm:$0xff] %vm570_vm2, %v1740_v54 }
 0x35c   : > { %v1744_v56 = vpop.eup %1743  ;;  %1336 = vst [vmem:[%s2642_s12 + $0x30] sm:$0xff] %v1742_v55 }
 0x35d   : > { %v1746_v57 = vpop.eup %1745  ;;  %1344 = vst [vmem:[%s2642_s12 + $0x70] sm:$0xff] %v1744_v56 }
 0x35e   : > { %1337 = vst.msk [vmem:[%s2642_s12 + $0x38] sm:$0xff] %vm570_vm2, %v1746_v57 }
 0x362   : > { %v1748_v13 = vpop.eup %1747 }
 0x363   : > { %1345 = vst.msk [vmem:[%s2642_s12 + $0x78] sm:$0xff] %vm570_vm2, %v1748_v13 }
 0x364   : > { %1762 = shalt.err (!%p1759_p3)
}
 0x365   : > { %s1763_s6 = scalar_lea.hbm %s2671_s17, 2048  ;;  %s1767_s9 = scalar_lea.hbm %s2724_s5, 4096 }
 0x366   : > { %p1764_p4 = scmp.ne.s32.totalorder %s2671_s17, %s1763_s6  ;;  %p1768_p9 = scmp.lt.s32.totalorder %s2671_s17, %s2724_s5 }
 0x367   : > { %p1769_p10 = scmp.lt.s32.totalorder %s1767_s9, %s1763_s6 }
 0x368   : > { %p1765_p7 = pnand %p1764_p4, %p1887_p5 }
 0x369   : > { %p1770_p11 = por %p1769_p10, %p1768_p9 }
 0x36a   : > { %p1766_p8 = pneg %p1765_p7 }
 0x36c   : > { %p1771_p12 = pnand %p1770_p11, %p1766_p8 }
 0x36e   : > { %1774 = shalt.err (!%p1771_p12)
}
 0x36f   : > { %s1817_s12 = smov 256   ;;  %s1818_s13 = smov 16  }
 0x370   : > { %1596 = dma.vmem_to_hbm [thread:$0]  (%p1887_p5), %s2673_s14, 2048, %s2671_s17, %s2679_s23, %s1817_s12, %s1817_s12, %s1818_s13  }
 0x371 PF: > { %p1602_p13 = scmp.ge.s32.totalorder %s1809_s21, 2  ;;  %s1375_s15 = sand.u32 1, %s1797_s18  }
 0x372   : > { %s1376_s16 = scalar_lea.sflag [#allocation3], %s1375_s15 }
 0x373   : > { %p1599_p0 = pnand %p1602_p13, %p1891_p6 }
 0x375   : > { %p1600_p1 = pneg %p1599_p0 }
 0x377   : > { %1792 = dma.done.wait (%p1600_p1), %s1376_s16, 2048  }
 0x378   : > { %1794 = vsyncadd (%p1600_p1), %s1376_s16, 4294965248  ;;  %p15_p2 = scmp.ge.s32.totalorder %s1874_s24, 4   ;;  %s2769_s18 = smov %s1801_s19 }
 0x379   : > { %s2770_s19 = smov %s1805_s20  ;;  %s2771_s20 = smov %s1885_s27 }
 0x37a   : > { %s2772_s21 = smov %s1874_s24  ;;  %17 = sbr.rel (!%p15_p2) target bundleno = 3 (0x3), region = 75 }
 0x37f   :  { %1381 = vsyncpa [#allocation3], 1 }
 0x380   :  { %1383 = vsyncpa [#allocation3 + $0x1], 1 }

</bundles_post_ra>
